<compile_context>
chip_gen: v5e
topology: v5e:2x2
jax: 0.10.0
libtpu: 0.0.40
codegen_flags: <defaults>
</compile_context>

<pallas_src>
import jax
import jax.numpy as jnp
from jax.experimental import pallas as pl
from jax.experimental.pallas import tpu as pltpu


def _round_up(x, m):
    return (x + m - 1) // m * m


def _make_expert_kernel(d_in, tk, mask_k_tail, use_scratch):
    """One (tm, tn) output tile; K is the last (resident/'arbitrary') axis."""

    def kernel(x_ref, w_ref, b_ref, o_ref, *scratch):
        acc_ref = scratch[0] if use_scratch else o_ref
        k = pl.program_id(2)

        # Zero the accumulator on the first K step.
        @pl.when(k == 0)
        def _():
            acc_ref[...] = jnp.zeros_like(acc_ref)

        x = x_ref[...]
        w = w_ref[...]
        if mask_k_tail:
            # Pallas does NOT zero-fill the out-of-bounds part of a ragged
            # edge block; zero both K tails (x columns and w rows) so stale
            # VMEM contents (possibly non-finite bit patterns) can never leak
            # into the accumulator.
            valid = d_in - k * tk
            kx = jax.lax.broadcasted_iota(jnp.int32, x.shape, 1)
            x = jnp.where(kx < valid, x, jnp.zeros_like(x))
            kw = jax.lax.broadcasted_iota(jnp.int32, w.shape, 0)
            w = jnp.where(kw < valid, w, jnp.zeros_like(w))

        # MXU matmul with f32 accumulation.
        acc_ref[...] += jnp.dot(x, w, preferred_element_type=jnp.float32)

        # On the final K step, fuse the bias add (and downcast if needed).
        @pl.when(k == pl.num_programs(2) - 1)
        def _():
            bias = b_ref[...].astype(jnp.float32)
            if use_scratch:
                o_ref[...] = (acc_ref[...] + bias).astype(o_ref.dtype)
            else:
                o_ref[...] += bias

    return kernel


def expert_forward(x, w, b, *, compute_dtype=None,
                   max_tm=512, max_tn=512, max_tk=None):
    """y = x @ w + b  (w already transposed to (input_dim, output_dim))."""
    B, D_in = x.shape
    D_out = w.shape[1]
    out_dtype = x.dtype

    # Optional MXU-native compute dtype (e.g. jnp.bfloat16 on v5e/v6e/v7x).
    # Accumulation and the bias add always stay f32.
    if compute_dtype is not None:
        x = x.astype(compute_dtype)
        w = w.astype(compute_dtype)
    in_itemsize = x.dtype.itemsize
    if max_tk is None:
        max_tk = 1024 if in_itemsize >= 4 else 2048

    # Tile selection: each tile dim either equals the full array dim (so there
    # is no edge at all) or is an (8, 128)-aligned cap whose ragged last block
    # is handled by Pallas (M / N) or by in-kernel masking (K).
    tm = B if B <= max_tm else max_tm           # one M tile => W streamed once
    tn = D_out if D_out <= max_tn else max_tn
    tk = D_in if D_in <= max_tk else max_tk

    m_blocks = pl.cdiv(B, tm)
    n_blocks = pl.cdiv(D_out, tn)
    k_blocks = pl.cdiv(D_in, tk)

    # v7x has 2 TensorCores: keep >= 2 blocks on a "parallel" axis when the
    # problem allows it so dimension_semantics can shard across both cores.
    if m_blocks == 1 and n_blocks == 1 and D_out >= 256:
        tn = _round_up(pl.cdiv(D_out, 2), 128)
        n_blocks = pl.cdiv(D_out, tn)

    mask_k_tail = (k_blocks > 1) and (D_in % tk != 0)
    use_scratch = out_dtype != jnp.float32      # f32 outputs accumulate in-place

    b2d = b.reshape(1, D_out)
    grid = (m_blocks, n_blocks, k_blocks)
    kernel = _make_expert_kernel(D_in, tk, mask_k_tail, use_scratch)

    # Advisory cost for XLA's scheduler (post-cast dtypes, real re-stream
    # factors: x is read once per N block, w once per M block).
    cost = pl.CostEstimate(
        flops=2 * B * D_in * D_out,
        transcendentals=0,
        bytes_accessed=int(
            n_blocks * x.size * x.dtype.itemsize
            + m_blocks * w.size * w.dtype.itemsize
            + b2d.size * b2d.dtype.itemsize
            + B * D_out * jnp.dtype(out_dtype).itemsize
        ),
    )

    # Double-buffered VMEM footprint (+ headroom), capped so it also fits
    # v7x's 64 MiB physical VMEM.
    vmem_need = (
        2 * (tm * tk + tk * tn) * in_itemsize
        + 2 * tn * b2d.dtype.itemsize
        + 2 * tm * tn * jnp.dtype(out_dtype).itemsize
        + (tm * tn * 4 if use_scratch else 0)
    )
    vmem_limit = int(min(48 * 1024 * 1024, max(32 * 1024 * 1024, 2 * vmem_need)))

    return pl.pallas_call(
        kernel,
        out_shape=jax.ShapeDtypeStruct((B, D_out), out_dtype),
        grid_spec=pltpu.PrefetchScalarGridSpec(
            num_scalar_prefetch=0,
            grid=grid,
            in_specs=[
                pl.BlockSpec((tm, tk), lambda i, j, k: (i, k)),   # x tile
                pl.BlockSpec((tk, tn), lambda i, j, k: (k, j)),   # w tile
                pl.BlockSpec((1, tn), lambda i, j, k: (0, j)),    # bias tile
            ],
            out_specs=pl.BlockSpec((tm, tn), lambda i, j, k: (i, j)),
            scratch_shapes=(
                [pltpu.VMEM((tm, tn), jnp.float32)] if use_scratch else []
            ),
        ),
        compiler_params=pltpu.CompilerParams(
            dimension_semantics=("parallel", "parallel", "arbitrary"),
            vmem_limit_bytes=vmem_limit,
        ),
        cost_estimate=cost,
    )(x, w, b2d)


if __name__ == "__main__":
    key = jax.random.PRNGKey(0)
    kx, kw, kb, kx2, kw2, kb2 = jax.random.split(key, 6)

    # --- Small test at the module's implied shapes: x (batch, input_dim). ---
    batch, input_dim, output_dim = 8, 32, 16
    bound = 1.0 / (input_dim ** 0.5)
    x = jax.random.normal(kx, (batch, input_dim), dtype=jnp.float32)
    w_t = jax.random.uniform(kw, (input_dim, output_dim), dtype=jnp.float32,
                             minval=-bound, maxval=bound)
    b = jax.random.uniform(kb, (output_dim,), dtype=jnp.float32,
                           minval=-bound, maxval=bound)

    y = jax.block_until_ready(expert_forward(x, w_t, b))
    y_ref = x @ w_t + b
    assert y.shape == (batch, output_dim)
    assert jnp.allclose(y, y_ref, atol=1e-5, rtol=1e-5)

    # bf16 inputs (bf16 output -> scratch-accumulator path).
    y_bf16 = jax.block_until_ready(
        expert_forward(x.astype(jnp.bfloat16), w_t.astype(jnp.bfloat16),
                       b.astype(jnp.bfloat16)))
    assert y_bf16.dtype == jnp.bfloat16
    assert jnp.allclose(y_bf16.astype(jnp.float32), y_ref, atol=5e-2, rtol=5e-2)

    # --- Larger test: multi-tile grid, ragged M/N edges and a masked K tail. ---
    B2, Din2, Dout2 = 200, 1200, 640
    bound2 = 1.0 / (Din2 ** 0.5)
    x2 = jax.random.normal(kx2, (B2, Din2), dtype=jnp.float32)
    w2 = jax.random.uniform(kw2, (Din2, Dout2), dtype=jnp.float32,
                            minval=-bound2, maxval=bound2)
    b2 = jax.random.uniform(kb2, (Dout2,), dtype=jnp.float32,
                            minval=-bound2, maxval=bound2)
    y2_ref = jnp.dot(x2, w2, precision=jax.lax.Precision.HIGHEST) + b2

    y2 = jax.block_until_ready(expert_forward(x2, w2, b2))
    assert y2.shape == (B2, Dout2)
    assert jnp.allclose(y2, y2_ref, atol=3e-2, rtol=3e-2)

    # bf16 compute dtype (f32 output / f32 accumulation): the fast MXU path.
    y3 = jax.block_until_ready(
        expert_forward(x2, w2, b2, compute_dtype=jnp.bfloat16))
    assert y3.shape == (B2, Dout2) and y3.dtype == jnp.float32
    assert jnp.allclose(y3, y2_ref, atol=6e-2, rtol=6e-2)

    print("KERNEL_OK")
</pallas_src>

<mosaic_0001>
module attributes {stable_mosaic.version = 11 : i64} {
  func.func @kernel(%arg0: i32, %arg1: i32, %arg2: i32, %arg3: memref<8x32xf32, #tpu.memory_space<vmem>>, %arg4: memref<32x16xf32, #tpu.memory_space<vmem>>, %arg5: memref<1x16xf32, #tpu.memory_space<vmem>>, %arg6: memref<8x16xf32, #tpu.memory_space<vmem>>) attributes {dimension_semantics = [#tpu.dimension_semantics<parallel>, #tpu.dimension_semantics<parallel>, #tpu.dimension_semantics<arbitrary>], iteration_bounds = array<i64: 1, 1, 1>, scalar_prefetch = 0 : i64, scratch_operands = 0 : i64, tpu.core_type = #tpu.core_type<tc>, window_params = [{transform_indices = @transform_0, window_bounds = array<i64: 8, 32>}, {transform_indices = @transform_1, window_bounds = array<i64: 32, 16>}, {transform_indices = @transform_2, window_bounds = array<i64: 1, 16>}, {transform_indices = @transform_3, window_bounds = array<i64: 8, 16>}]} {
    %c0_i32 = arith.constant 0 : i32
    %0 = arith.cmpi eq, %arg2, %c0_i32 : i32
    %1 = arith.extui %0 : i1 to i32
    %c0_i32_0 = arith.constant 0 : i32
    %2 = arith.cmpi ne, %1, %c0_i32_0 : i32
    scf.if %2 {
      %cst_10 = arith.constant 0.000000e+00 : f32
      %12 = vector.broadcast %cst_10 : f32 to vector<8x16xf32>
      %c0_11 = arith.constant 0 : index
      %c0_12 = arith.constant 0 : index
      %13 = vector.load %arg6[%c0_11, %c0_12] : memref<8x16xf32, #tpu.memory_space<vmem>>, vector<8x16xf32>
      tpu.vector_store %arg6[%c0_11, %c0_12], %12 {strides = array<i32>} : memref<8x16xf32, #tpu.memory_space<vmem>>, vector<8x16xf32>,
    } else {
    }
    %c0 = arith.constant 0 : index
    %c0_1 = arith.constant 0 : index
    %3 = vector.load %arg3[%c0, %c0_1] : memref<8x32xf32, #tpu.memory_space<vmem>>, vector<8x32xf32>
    %c0_2 = arith.constant 0 : index
    %c0_3 = arith.constant 0 : index
    %4 = vector.load %arg4[%c0_2, %c0_3] : memref<32x16xf32, #tpu.memory_space<vmem>>, vector<32x16xf32>
    %c0_4 = arith.constant 0 : index
    %c0_5 = arith.constant 0 : index
    %5 = vector.load %arg6[%c0_4, %c0_5] : memref<8x16xf32, #tpu.memory_space<vmem>>, vector<8x16xf32>
    %cst = arith.constant dense<0.000000e+00> : vector<8x16xf32>
    %6 = tpu.matmul %3, %4, %cst {dimension_numbers = #tpu.dot_dimension_numbers<[1], [0], [0], [1], [0, 0, 1, 1], [], []>} : vector<8x32xf32>, vector<32x16xf32>, vector<8x16xf32> -> vector<8x16xf32>
    %7 = arith.addf %5, %6 : vector<8x16xf32>
    %c0_6 = arith.constant 0 : index
    %c0_7 = arith.constant 0 : index
    %8 = vector.load %arg6[%c0_6, %c0_7] : memref<8x16xf32, #tpu.memory_space<vmem>>, vector<8x16xf32>
    tpu.vector_store %arg6[%c0_6, %c0_7], %7 {strides = array<i32>} : memref<8x16xf32, #tpu.memory_space<vmem>>, vector<8x16xf32>,
    %c0_i32_8 = arith.constant 0 : i32
    %9 = arith.cmpi eq, %arg2, %c0_i32_8 : i32
    %10 = arith.extui %9 : i1 to i32
    %c0_i32_9 = arith.constant 0 : i32
    %11 = arith.cmpi ne, %10, %c0_i32_9 : i32
    scf.if %11 {
      %c0_10 = arith.constant 0 : index
      %c0_11 = arith.constant 0 : index
      %12 = vector.load %arg5[%c0_10, %c0_11] : memref<1x16xf32, #tpu.memory_space<vmem>>, vector<1x16xf32>
      %c0_12 = arith.constant 0 : index
      %c0_13 = arith.constant 0 : index
      %13 = vector.load %arg6[%c0_12, %c0_13] : memref<8x16xf32, #tpu.memory_space<vmem>>, vector<8x16xf32>
      %14 = vector.broadcast %12 : vector<1x16xf32> to vector<8x16xf32>
      %15 = arith.addf %13, %14 : vector<8x16xf32>
      %c0_14 = arith.constant 0 : index
      %c0_15 = arith.constant 0 : index
      %16 = vector.load %arg6[%c0_14, %c0_15] : memref<8x16xf32, #tpu.memory_space<vmem>>, vector<8x16xf32>
      tpu.vector_store %arg6[%c0_14, %c0_15], %15 {strides = array<i32>} : memref<8x16xf32, #tpu.memory_space<vmem>>, vector<8x16xf32>,
    } else {
    }
    return
  }
  func.func @transform_0(%arg0: i32, %arg1: i32, %arg2: i32) -> (i32, i32) {
    %c0_i32 = arith.constant 0 : i32
    return %arg0, %arg2 : i32, i32
  }
  func.func @transform_1(%arg0: i32, %arg1: i32, %arg2: i32) -> (i32, i32) {
    %c0_i32 = arith.constant 0 : i32
    return %arg2, %arg1 : i32, i32
  }
  func.func @transform_2(%arg0: i32, %arg1: i32, %arg2: i32) -> (i32, i32) {
    %c0_i32 = arith.constant 0 : i32
    %c0_i32_0 = arith.constant 0 : i32
    return %c0_i32, %arg1 : i32, i32
  }
  func.func @transform_3(%arg0: i32, %arg1: i32, %arg2: i32) -> (i32, i32) {
    %c0_i32 = arith.constant 0 : i32
    return %arg0, %arg1 : i32, i32
  }
}

</mosaic_0001>

<bundles_post_ra>
// kernel: tpu_custom_call.1
= control target key start
LH: loop header
LB: loop body
LE: loop exit
PB: predicated region body
PF: predicated region fallthrough
CT: control target
= control target key end

     0   :  { %vm19_vm0 = vcmask 130048   ;;  %v110_v2 = vmov 0.0   ;;  %s156_s0 = inlined_call_operand.vmem [shape: f32[8,32], index: 0, kind: input, shape index: {}]   ;;  %s157_s1 = inlined_call_operand.vmem [shape: f32[32,16], index: 1, kind: input, shape index: {}]   ;;  %s158_s2 = inlined_call_operand.vmem [shape: f32[1,16], index: 2, kind: input, shape index: {}]   ;;  %s159_s3 = inlined_call_operand.hbm [shape: f32[8,16], index: 3, kind: output, shape index: {}]  }
   0x1   :  { %v25_v0 = vld [vmem:[%s157_s1 + $0x18] sm:$0xff]  ;;  %v24_v1 = vld [vmem:[%s157_s1 + $0x10] sm:$0xff]  ;;  %20 = vst.msk [vmem:[#allocation2] sm:$0xff] %vm19_vm0, %v110_v2 }
   0x2   :  { %43 = vmatpush.msra.mxu0 %v25_v0 }
   0x3   :  { %8 = vsyncpa [#allocation3], 0  ;;  %v23_v3 = vld [vmem:[%s157_s1 + $0x8] sm:$0xff]  ;;  %v22_v4 = vld [vmem:[%s157_s1] sm:$0xff]  ;;  %vm27_vm1 = vcmask 261120   ;;  %s111_s24 = smov [#allocation2]  }
   0x4   :  { %44 = vmatpush.msra.mxu0 %v24_v1  ;;  %v21_v5 = vld [vmem:[%s156_s0] sm:$0xff]  ;;  %s69_s25 = sshll.u32 %s111_s24, 4  ;;  %s71_s27 = sshll.u32 %s159_s3, 4  ;;  %s70_s25 = int_to_ptr.vmem [resolvable:$true] %s69_s25  ;;  %s72_s27 = int_to_ptr.hbm [resolvable:$true] %s71_s27 }
   0x5   :  { %v83_v9 = vld [vmem:[%s158_s2] ss:$0 sm:$0xff] }
   0x6   :  { %45 = vmatpush.msra.mxu0 %v23_v3 }
   0x8   :  { %46 = vmatpush.msra.mxu0 %v22_v4  ;;  %v26_v6 = vld [vmem:[#allocation2] sm:$0xff] }
   0x9   :  { %80 = vmatmul.msk.f32.vlgmr.msra.gmra.mxu0 %vm27_vm1, %v21_v5 }
  0x86   :  { %v48_v7 = vpop.f32.mrf.mxu0 }
  0x87   :  { %v51_v8 = vadd.f32 %v48_v7, %v26_v6 }
  0x89   :  { %53 = vst.msk [vmem:[#allocation2] sm:$0xff] %vm19_vm0, %v51_v8 }
  0x90   :  { %v58_v10 = vld [vmem:[#allocation2] sm:$0xff] }
  0x91   :  { %v62_v11 = vadd.f32 %v83_v9, %v58_v10 }
  0x93   :  { %63 = vst.msk [vmem:[#allocation2] sm:$0xff] %vm19_vm0, %v62_v11 }
  0x94   :  { %74 = dma.vmem_to_hbm [thread:$0]  %s70_s25, 128, %s72_s27, [#allocation3]  }
  0x95   :  { %108 = dma.done.wait [#allocation3], 128  }
  0x96   :  { %109 = vsyncadd [#allocation3], 4294967168 }
  0x97   :  { %79 = vsyncpa [#allocation3], 1 }

</bundles_post_ra>
